<compile_context>
chip_gen: v7x
topology: tpu7x:2x2x1
jax: 0.10.0
libtpu: 0.0.40
codegen_flags: <defaults>
</compile_context>

<pallas_src>
import jax
import jax.numpy as jnp
from jax.experimental import pallas as pl
from jax.experimental.pallas import tpu as pltpu

HIDDEN = 256
LANE = 128
ALIGN = 16  # batch-tile alignment: covers f32 (8) and bf16 (16) sublane packing


def _round_up(x, m):
    return (x + m - 1) // m * m


def actor_kernel(ma_ref, s_ref, w1_ref, b1_ref, w2_ref, b2_ref, w3_ref, b3_ref,
                 o_ref):
    max_action = ma_ref[0]                      # SMEM scalar
    # In-kernel f32 -> bf16 cast of the state tile (removes the wrapper-side
    # convert + extra HBM round trip).
    x = s_ref[...].astype(w1_ref.dtype)
    # Layer 1: (TB, S)bf16 @ (S, 256)bf16 -> f32, bias + ReLU in f32
    a = jnp.dot(x, w1_ref[...], preferred_element_type=jnp.float32)
    a = jnp.maximum(a + b1_ref[...], 0.0)
    # Layer 2: (TB, 256) @ (256, 256) -> f32, bias + ReLU in f32
    a = jnp.dot(a.astype(w2_ref.dtype), w2_ref[...],
                preferred_element_type=jnp.float32)
    a = jnp.maximum(a + b2_ref[...], 0.0)
    # Layer 3: (TB, 256) @ (256, A_pad) -> f32, bias + tanh + scale in f32
    a = jnp.dot(a.astype(w3_ref.dtype), w3_ref[...],
                preferred_element_type=jnp.float32)
    o_ref[...] = (max_action * jnp.tanh(a + b3_ref[...])).astype(o_ref.dtype)


def init_actor_params(key, state_dim, action_dim, hidden=HIDDEN):
    """Deterministic PyTorch-style (uniform +/- 1/sqrt(fan_in)) init, PyTorch layout."""
    ks = jax.random.split(key, 6)

    def lin(kw, kb, fan_in, fan_out):
        bound = 1.0 / jnp.sqrt(fan_in)
        w = jax.random.uniform(kw, (fan_out, fan_in), jnp.float32, -bound, bound)
        b = jax.random.uniform(kb, (fan_out,), jnp.float32, -bound, bound)
        return w, b

    w1, b1 = lin(ks[0], ks[1], state_dim, hidden)
    w2, b2 = lin(ks[2], ks[3], hidden, hidden)
    w3, b3 = lin(ks[4], ks[5], hidden, action_dim)
    return {"w1": w1, "b1": b1, "w2": w2, "b2": b2, "w3": w3, "b3": b3}


def prepare_actor_params(params, compute_dtype=jnp.bfloat16):
    """One-time conversion: PyTorch (out,in) weights -> (in,out) bf16, biases ->
    (1,out) f32 rows, action dim zero-padded to a 128-lane multiple."""
    action_dim = params["w3"].shape[0]
    a_pad = _round_up(action_dim, LANE)
    w1 = params["w1"].T.astype(compute_dtype)                       # (S, 256)
    w2 = params["w2"].T.astype(compute_dtype)                       # (256, 256)
    w3 = jnp.zeros((HIDDEN, a_pad), compute_dtype).at[:, :action_dim].set(
        params["w3"].T.astype(compute_dtype))                       # (256, A_pad)
    b1 = params["b1"].reshape(1, -1).astype(jnp.float32)
    b2 = params["b2"].reshape(1, -1).astype(jnp.float32)
    b3 = jnp.zeros((1, a_pad), jnp.float32).at[:, :action_dim].set(
        params["b3"].reshape(1, -1).astype(jnp.float32))
    return {"w1": w1, "b1": b1, "w2": w2, "b2": b2, "w3": w3, "b3": b3}


def _batch_tiling(B, block_b):
    """Tile size / block count for the batch axis.

    Guarantees >= 2 grid blocks whenever the batch is big enough (so v7x can
    use both TensorCores) while keeping the pad to at most one tile + 15 rows.
    """
    if B >= 2 * ALIGN:
        num_blocks = max(2, pl.cdiv(B, block_b))
    else:
        num_blocks = 1
    tb = _round_up(pl.cdiv(B, num_blocks), ALIGN)
    num_blocks = pl.cdiv(B, tb)
    return tb, num_blocks


def actor_forward(state, kp, action_dim, max_action, *, block_b=2048,
                  out_dtype=jnp.bfloat16):
    """state: (B, state_dim) f32.  kp: output of prepare_actor_params."""
    B, state_dim = state.shape
    a_pad = kp["w3"].shape[1]

    tb, num_blocks = _batch_tiling(B, block_b)
    b_pad = num_blocks * tb

    s = state
    if b_pad != B:
        # Zero-pad so boundary tiles never read uninitialized rows.
        s = jnp.pad(s, ((0, b_pad - B), (0, 0)))

    ma = jnp.full((1,), max_action, jnp.float32)

    const = lambda i: (0, 0)
    out = pl.pallas_call(
        actor_kernel,
        out_shape=jax.ShapeDtypeStruct((b_pad, a_pad), out_dtype),
        grid=(num_blocks,),
        in_specs=[
            pl.BlockSpec(memory_space=pltpu.MemorySpace.SMEM),        # max_action
            pl.BlockSpec((tb, state_dim), lambda i: (i, 0)),          # state tile (f32)
            pl.BlockSpec((state_dim, HIDDEN), const),                 # w1 (resident)
            pl.BlockSpec((1, HIDDEN), const),                         # b1
            pl.BlockSpec((HIDDEN, HIDDEN), const),                    # w2
            pl.BlockSpec((1, HIDDEN), const),                         # b2
            pl.BlockSpec((HIDDEN, a_pad), const),                     # w3 (padded)
            pl.BlockSpec((1, a_pad), const),                          # b3 (padded)
        ],
        out_specs=pl.BlockSpec((tb, a_pad), lambda i: (i, 0)),
        compiler_params=pltpu.CompilerParams(
            dimension_semantics=("parallel",)),
    )(ma, s, kp["w1"], kp["b1"], kp["w2"], kp["b2"], kp["w3"], kp["b3"])

    return out[:B, :action_dim]


def actor_reference(state, params, max_action):
    """Pure-JAX f32 reference mirroring the PyTorch module."""
    a = jnp.maximum(state @ params["w1"].T + params["b1"], 0.0)
    a = jnp.maximum(a @ params["w2"].T + params["b2"], 0.0)
    return max_action * jnp.tanh(a @ params["w3"].T + params["b3"])


def actor_reference_bf16(state, params, max_action):
    """Reference mirroring kernel precision: bf16 matmul operands, f32 accum/epilogue."""
    bf = jnp.bfloat16

    def dot(x, w):
        return jnp.dot(x.astype(bf), w.T.astype(bf),
                       preferred_element_type=jnp.float32)

    a = jnp.maximum(dot(state, params["w1"]) + params["b1"], 0.0)
    a = jnp.maximum(dot(a, params["w2"]) + params["b2"], 0.0)
    return max_action * jnp.tanh(dot(a, params["w3"]) + params["b3"])


if __name__ == "__main__":
    key = jax.random.PRNGKey(0)
    k_param, k_state = jax.random.split(key)

    batch = 2
    state_dim = 16
    action_dim = 4
    max_action = 2.0

    params = init_actor_params(k_param, state_dim, action_dim)
    kparams = prepare_actor_params(params)
    state = jax.random.normal(k_state, (batch, state_dim), jnp.float32)

    ref_q = actor_reference_bf16(state, params, max_action)
    ref_f = actor_reference(state, params, max_action)

    # f32-output path: tight check vs. a reference using the same bf16 operand precision.
    out_f32 = jax.block_until_ready(
        actor_forward(state, kparams, action_dim, max_action, out_dtype=jnp.float32))
    assert out_f32.shape == (batch, action_dim), out_f32.shape
    assert jnp.allclose(out_f32, ref_q, atol=2e-3, rtol=2e-3), (
        f"max abs diff vs bf16 ref {jnp.max(jnp.abs(out_f32 - ref_q))}")
    # Loose check vs. full-f32 PyTorch-equivalent reference (bf16 weight quantization).
    assert jnp.allclose(out_f32, ref_f, atol=1e-1, rtol=1e-1), (
        f"max abs diff vs f32 ref {jnp.max(jnp.abs(out_f32 - ref_f))}")

    # Default bf16-output path (looser tolerance: bf16 store quantization).
    out_bf16 = jax.block_until_ready(
        actor_forward(state, kparams, action_dim, max_action))
    assert out_bf16.shape == (batch, action_dim), out_bf16.shape
    assert out_bf16.dtype == jnp.bfloat16, out_bf16.dtype
    assert jnp.allclose(out_bf16.astype(jnp.float32), ref_q, atol=2e-2, rtol=2e-2), (
        f"max abs diff vs bf16 ref {jnp.max(jnp.abs(out_bf16.astype(jnp.float32) - ref_q))}")

    # Exercise multi-block grid + padding (non-multiple-of-16 batch, >= 2 blocks).
    big_state = jax.random.normal(jax.random.PRNGKey(1), (300, state_dim), jnp.float32)
    big_ref = actor_reference_bf16(big_state, params, max_action)

    big_f32 = jax.block_until_ready(
        actor_forward(big_state, kparams, action_dim, max_action,
                      block_b=128, out_dtype=jnp.float32))
    assert big_f32.shape == (300, action_dim), big_f32.shape
    assert jnp.allclose(big_f32, big_ref, atol=2e-3, rtol=2e-3), (
        f"max abs diff (tiled f32) {jnp.max(jnp.abs(big_f32 - big_ref))}")

    big_bf16 = jax.block_until_ready(
        actor_forward(big_state, kparams, action_dim, max_action))  # 2 blocks of 160
    assert big_bf16.shape == (300, action_dim), big_bf16.shape
    assert jnp.allclose(big_bf16.astype(jnp.float32), big_ref, atol=2e-2, rtol=2e-2), (
        f"max abs diff (tiled bf16) "
        f"{jnp.max(jnp.abs(big_bf16.astype(jnp.float32) - big_ref))}")

    print("KERNEL_OK")
</pallas_src>

<mosaic_0001>
module attributes {stable_mosaic.version = 11 : i64} {
  func.func @actor_kernel(%arg0: i32, %arg1: memref<1xf32, #tpu.memory_space<smem>>, %arg2: memref<16x16xf32, #tpu.memory_space<vmem>>, %arg3: memref<16x256xbf16, #tpu.memory_space<vmem>>, %arg4: memref<1x256xf32, #tpu.memory_space<vmem>>, %arg5: memref<256x256xbf16, #tpu.memory_space<vmem>>, %arg6: memref<1x256xf32, #tpu.memory_space<vmem>>, %arg7: memref<256x128xbf16, #tpu.memory_space<vmem>>, %arg8: memref<1x128xf32, #tpu.memory_space<vmem>>, %arg9: memref<16x128xf32, #tpu.memory_space<vmem>>) attributes {dimension_semantics = [#tpu.dimension_semantics<parallel>], iteration_bounds = array<i64: 1>, scalar_prefetch = 0 : i64, scratch_operands = 0 : i64, tpu.core_type = #tpu.core_type<tc>, window_params = [{transform_indices = @transform_0, window_bounds = array<i64: 1>}, {transform_indices = @transform_1, window_bounds = array<i64: 16, 16>}, {pipeline_mode = #tpu.pipeline_mode<synchronous>, transform_indices = @transform_2, window_bounds = array<i64: 16, 256>}, {pipeline_mode = #tpu.pipeline_mode<synchronous>, transform_indices = @transform_3, window_bounds = array<i64: 1, 256>}, {pipeline_mode = #tpu.pipeline_mode<synchronous>, transform_indices = @transform_4, window_bounds = array<i64: 256, 256>}, {pipeline_mode = #tpu.pipeline_mode<synchronous>, transform_indices = @transform_5, window_bounds = array<i64: 1, 256>}, {pipeline_mode = #tpu.pipeline_mode<synchronous>, transform_indices = @transform_6, window_bounds = array<i64: 256, 128>}, {pipeline_mode = #tpu.pipeline_mode<synchronous>, transform_indices = @transform_7, window_bounds = array<i64: 1, 128>}, {transform_indices = @transform_8, window_bounds = array<i64: 16, 128>}]} {
    %c0 = arith.constant 0 : index
    %0 = memref.load %arg1[%c0] : memref<1xf32, #tpu.memory_space<smem>>
    %c0_0 = arith.constant 0 : index
    %c0_1 = arith.constant 0 : index
    %1 = vector.load %arg2[%c0_0, %c0_1] : memref<16x16xf32, #tpu.memory_space<vmem>>, vector<16x16xf32>
    %2 = arith.truncf %1 : vector<16x16xf32> to vector<16x16xbf16>
    %c0_2 = arith.constant 0 : index
    %c0_3 = arith.constant 0 : index
    %3 = vector.load %arg3[%c0_2, %c0_3] : memref<16x256xbf16, #tpu.memory_space<vmem>>, vector<16x256xbf16>
    %cst = arith.constant dense<0.000000e+00> : vector<16x256xf32>
    %4 = tpu.matmul %2, %3, %cst {dimension_numbers = #tpu.dot_dimension_numbers<[1], [0], [0], [1], [0, 0, 1, 1], [], []>} : vector<16x16xbf16>, vector<16x256xbf16>, vector<16x256xf32> -> vector<16x256xf32>
    %c0_4 = arith.constant 0 : index
    %c0_5 = arith.constant 0 : index
    %5 = vector.load %arg4[%c0_4, %c0_5] : memref<1x256xf32, #tpu.memory_space<vmem>>, vector<1x256xf32>
    %6 = vector.broadcast %5 : vector<1x256xf32> to vector<16x256xf32>
    %7 = arith.addf %4, %6 : vector<16x256xf32>
    %cst_6 = arith.constant 0.000000e+00 : f32
    %8 = vector.broadcast %cst_6 : f32 to vector<16x256xf32>
    %9 = arith.maximumf %7, %8 : vector<16x256xf32>
    %10 = arith.truncf %9 : vector<16x256xf32> to vector<16x256xbf16>
    %c0_7 = arith.constant 0 : index
    %c0_8 = arith.constant 0 : index
    %11 = vector.load %arg5[%c0_7, %c0_8] : memref<256x256xbf16, #tpu.memory_space<vmem>>, vector<256x256xbf16>
    %cst_9 = arith.constant dense<0.000000e+00> : vector<16x256xf32>
    %12 = tpu.matmul %10, %11, %cst_9 {dimension_numbers = #tpu.dot_dimension_numbers<[1], [0], [0], [1], [0, 0, 1, 1], [], []>} : vector<16x256xbf16>, vector<256x256xbf16>, vector<16x256xf32> -> vector<16x256xf32>
    %c0_10 = arith.constant 0 : index
    %c0_11 = arith.constant 0 : index
    %13 = vector.load %arg6[%c0_10, %c0_11] : memref<1x256xf32, #tpu.memory_space<vmem>>, vector<1x256xf32>
    %14 = vector.broadcast %13 : vector<1x256xf32> to vector<16x256xf32>
    %15 = arith.addf %12, %14 : vector<16x256xf32>
    %cst_12 = arith.constant 0.000000e+00 : f32
    %16 = vector.broadcast %cst_12 : f32 to vector<16x256xf32>
    %17 = arith.maximumf %15, %16 : vector<16x256xf32>
    %18 = arith.truncf %17 : vector<16x256xf32> to vector<16x256xbf16>
    %c0_13 = arith.constant 0 : index
    %c0_14 = arith.constant 0 : index
    %19 = vector.load %arg7[%c0_13, %c0_14] : memref<256x128xbf16, #tpu.memory_space<vmem>>, vector<256x128xbf16>
    %cst_15 = arith.constant dense<0.000000e+00> : vector<16x128xf32>
    %20 = tpu.matmul %18, %19, %cst_15 {dimension_numbers = #tpu.dot_dimension_numbers<[1], [0], [0], [1], [0, 0, 1, 1], [], []>} : vector<16x256xbf16>, vector<256x128xbf16>, vector<16x128xf32> -> vector<16x128xf32>
    %c0_16 = arith.constant 0 : index
    %c0_17 = arith.constant 0 : index
    %21 = vector.load %arg8[%c0_16, %c0_17] : memref<1x128xf32, #tpu.memory_space<vmem>>, vector<1x128xf32>
    %22 = vector.broadcast %21 : vector<1x128xf32> to vector<16x128xf32>
    %23 = arith.addf %20, %22 : vector<16x128xf32>
    %24 = math.tanh %23 : vector<16x128xf32>
    %25 = vector.broadcast %0 : f32 to vector<16x128xf32>
    %26 = arith.mulf %25, %24 : vector<16x128xf32>
    %c0_18 = arith.constant 0 : index
    %c0_19 = arith.constant 0 : index
    %27 = vector.load %arg9[%c0_18, %c0_19] : memref<16x128xf32, #tpu.memory_space<vmem>>, vector<16x128xf32>
    tpu.vector_store %arg9[%c0_18, %c0_19], %26 {strides = array<i32>} : memref<16x128xf32, #tpu.memory_space<vmem>>, vector<16x128xf32>,
    return
  }
  func.func @transform_0(%arg0: i32) -> i32 {
    %c0_i32 = arith.constant 0 : i32
    %c0_i32_0 = arith.constant 0 : i32
    return %c0_i32 : i32
  }
  func.func @transform_1(%arg0: i32) -> (i32, i32) {
    %c0_i32 = arith.constant 0 : i32
    %c0_i32_0 = arith.constant 0 : i32
    return %arg0, %c0_i32 : i32, i32
  }
  func.func @transform_2(%arg0: i32) -> (i32, i32) {
    %c0_i32 = arith.constant 0 : i32
    %c0_i32_0 = arith.constant 0 : i32
    %c0_i32_1 = arith.constant 0 : i32
    return %c0_i32, %c0_i32_0 : i32, i32
  }
  func.func @transform_3(%arg0: i32) -> (i32, i32) {
    %c0_i32 = arith.constant 0 : i32
    %c0_i32_0 = arith.constant 0 : i32
    %c0_i32_1 = arith.constant 0 : i32
    return %c0_i32, %c0_i32_0 : i32, i32
  }
  func.func @transform_4(%arg0: i32) -> (i32, i32) {
    %c0_i32 = arith.constant 0 : i32
    %c0_i32_0 = arith.constant 0 : i32
    %c0_i32_1 = arith.constant 0 : i32
    return %c0_i32, %c0_i32_0 : i32, i32
  }
  func.func @transform_5(%arg0: i32) -> (i32, i32) {
    %c0_i32 = arith.constant 0 : i32
    %c0_i32_0 = arith.constant 0 : i32
    %c0_i32_1 = arith.constant 0 : i32
    return %c0_i32, %c0_i32_0 : i32, i32
  }
  func.func @transform_6(%arg0: i32) -> (i32, i32) {
    %c0_i32 = arith.constant 0 : i32
    %c0_i32_0 = arith.constant 0 : i32
    %c0_i32_1 = arith.constant 0 : i32
    return %c0_i32, %c0_i32_0 : i32, i32
  }
  func.func @transform_7(%arg0: i32) -> (i32, i32) {
    %c0_i32 = arith.constant 0 : i32
    %c0_i32_0 = arith.constant 0 : i32
    %c0_i32_1 = arith.constant 0 : i32
    return %c0_i32, %c0_i32_0 : i32, i32
  }
  func.func @transform_8(%arg0: i32) -> (i32, i32) {
    %c0_i32 = arith.constant 0 : i32
    %c0_i32_0 = arith.constant 0 : i32
    return %arg0, %c0_i32 : i32, i32
  }
}

</mosaic_0001>

<bundles_post_ra>
// kernel: tpu_custom_call.1
= control target key start
LH: loop header
LB: loop body
LE: loop exit
PB: predicated region body
PF: predicated region fallthrough
CT: control target
= control target key end

     0   :  { %14 = vsyncpa [#allocation4], 0  ;;  %s1049_s0 = inlined_call_operand.<no memory space> [shape: f32[1], index: 0, kind: input, shape index: {}]   ;;  %s1050_s1 = inlined_call_operand.hbm [shape: f32[16,16], index: 1, kind: input, shape index: {}]   ;;  %s1051_s2 = inlined_call_operand.hbm [shape: bf16[16,256], index: 2, kind: input, shape index: {}]   ;;  %s1052_s3 = inlined_call_operand.vmem [shape: f32[1,256], index: 3, kind: input, shape index: {}]   ;;  %s1053_s4 = inlined_call_operand.hbm [shape: bf16[256,256], index: 4, kind: input, shape index: {}]   ;;  %s1054_s5 = inlined_call_operand.vmem [shape: f32[1,256], index: 5, kind: input, shape index: {}]   ;;  %s1055_s6 = inlined_call_operand.hbm [shape: bf16[256,128], index: 6, kind: input, shape index: {}]   ;;  %s1056_s7 = inlined_call_operand.vmem [shape: f32[1,128], index: 7, kind: input, shape index: {}]   ;;  %s1057_s8 = inlined_call_operand.hbm [shape: f32[16,128], index: 8, kind: output, shape index: {}]  }
   0x1   :  { %15 = vsyncpa [#allocation7], 0 }
   0x2   :  { %16 = vsyncpa [#allocation10], 0 }
   0x3   :  { %17 = vsyncpa [#allocation5], 0  ;;  %s896_s27 = smov [#allocation6]   ;;  %s897_s29 = smov [#allocation3]  }
   0x4   :  { %s37_s28 = sshll.u32 %s896_s27, 4  ;;  %s25_s30 = sshll.u32 %s897_s29, 4  ;;  %s38_s28 = int_to_ptr.vmem [resolvable:$true] %s37_s28  ;;  %s951_s30 = int_to_ptr.vmem [resolvable:$true] %s25_s30 }
   0x5   :  { %s778_s11 = scalar_lea.hbm %s1051_s2, 256 }
   0x6   :  { %p779_p0 = scmp.ne.s32.totalorder %s1051_s2, %s778_s11  ;;  %p782_p1 = scmp.lt.u32.totalorder %s778_s11, %s1051_s2 }
   0x8   :  { %p784_p2 = pnand %p782_p1, %p779_p0 }
   0xa   :  { %787 = shalt.err (!%p784_p2)
}
   0xb   :  { %s788_s16 = scalar_lea.vmem %s38_s28, 256  ;;  %p793_p4 = scmp.lt.s32.totalorder %s38_s28, %s38_s28 }
   0xc   :  { %p789_p3 = scmp.ne.s32.totalorder %s38_s28, %s788_s16  ;;  %p794_p5 = scmp.lt.s32.totalorder %s788_s16, %s788_s16 }
   0xe   :  { %p795_p6 = por %p794_p5, %p793_p4 }
  0x10   :  { %p796_p7 = pnand %p795_p6, %p789_p3 }
  0x12   :  { %799 = shalt.err (!%p796_p7)
}
  0x13   :  { %s898_s17 = smov 128   ;;  %s899_s18 = smov 8  }
  0x14   :  { %43 = dma.hbm_to_vmem [thread:$0]  %s1051_s2, 256, %s38_s28, [#allocation7], %s898_s17, %s898_s17, %s899_s18  }
  0x15   :  { %s800_s23 = scalar_lea.hbm %s1050_s1, 256 }
  0x16   :  { %p801_p8 = scmp.ne.s32.totalorder %s1050_s1, %s800_s23  ;;  %p804_p9 = scmp.lt.u32.totalorder %s800_s23, %s1050_s1 }
  0x18   :  { %p806_p10 = pnand %p804_p9, %p801_p8 }
  0x1a   :  { %809 = shalt.err (!%p806_p10)
}
  0x1b   :  { %s810_s29 = scalar_lea.vmem %s951_s30, 256  ;;  %p815_p12 = scmp.lt.s32.totalorder %s951_s30, %s951_s30 }
  0x1c   :  { %p811_p11 = scmp.ne.s32.totalorder %s951_s30, %s810_s29  ;;  %p816_p13 = scmp.lt.s32.totalorder %s810_s29, %s810_s29 }
  0x1e   :  { %p817_p0 = por %p816_p13, %p815_p12 }
  0x20   :  { %p818_p1 = pnand %p817_p0, %p811_p11 }
  0x22   :  { %821 = shalt.err (!%p818_p1)
}
  0x23   :  { %31 = dma.hbm_to_vmem [thread:$0]  %s1050_s1, 256, %s951_s30, [#allocation4], %s898_s17, %s898_s17, %s899_s18  }
  0x24   :  { %s900_s9 = smov [#allocation8]   ;;  %s901_s11 = smov [#allocation9]  }
  0x25   :  { %s51_s10 = sshll.u32 %s900_s9, 4  ;;  %s65_s12 = sshll.u32 %s901_s11, 4  ;;  %s52_s10 = int_to_ptr.vmem [resolvable:$true] %s51_s10  ;;  %s988_s12 = int_to_ptr.vmem [resolvable:$true] %s65_s12 }
  0x26   :  { %s822_s15 = scalar_lea.hbm %s1053_s4, 4096 }
  0x27   :  { %p823_p2 = scmp.ne.s32.totalorder %s1053_s4, %s822_s15  ;;  %p826_p3 = scmp.lt.u32.totalorder %s822_s15, %s1053_s4 }
  0x29   :  { %p828_p4 = pnand %p826_p3, %p823_p2 }
  0x2b   :  { %831 = shalt.err (!%p828_p4)
}
  0x2c   :  { %s832_s1 = scalar_lea.vmem %s52_s10, 4096  ;;  %p837_p6 = scmp.lt.s32.totalorder %s52_s10, %s52_s10 }
  0x2d   :  { %p833_p5 = scmp.ne.s32.totalorder %s52_s10, %s832_s1  ;;  %p838_p7 = scmp.lt.s32.totalorder %s832_s1, %s832_s1 }
  0x2f   :  { %p839_p8 = por %p838_p7, %p837_p6 }
  0x31   :  { %p840_p9 = pnand %p839_p8, %p833_p5 }
  0x33   :  { %843 = shalt.err (!%p840_p9)
}
  0x34   :  { %57 = dma.hbm_to_vmem [thread:$0]  %s1053_s4, 4096, %s52_s10, [#allocation7], %s898_s17, %s898_s17, %s899_s18  }
  0x35   :  { %s844_s25 = scalar_lea.hbm %s1055_s6, 2048 }
  0x36   :  { %p845_p10 = scmp.ne.s32.totalorder %s1055_s6, %s844_s25  ;;  %p848_p11 = scmp.lt.u32.totalorder %s844_s25, %s1055_s6 }
  0x38   :  { %p850_p12 = pnand %p848_p11, %p845_p10 }
  0x3a   :  { %853 = shalt.err (!%p850_p12)
}
  0x3b   :  { %s854_s28 = scalar_lea.vmem %s988_s12, 2048  ;;  %p859_p0 = scmp.lt.s32.totalorder %s988_s12, %s988_s12 }
  0x3c   :  { %p855_p13 = scmp.ne.s32.totalorder %s988_s12, %s854_s28  ;;  %p860_p1 = scmp.lt.s32.totalorder %s854_s28, %s854_s28 }
  0x3e   :  { %p861_p2 = por %p860_p1, %p859_p0 }
  0x40   :  { %p862_p3 = pnand %p861_p2, %p855_p13 }
  0x42   :  { %865 = shalt.err (!%p862_p3)
}
  0x43   :  { %s902_s4 = smov 64   ;;  %s903_s9 = smov 4  }
  0x44   :  { %71 = dma.hbm_to_vmem [thread:$0]  %s1055_s6, 2048, %s988_s12, [#allocation10], %s902_s4, %s902_s4, %s903_s9  }
  0x45   :  { %888 = dma.done.wait [#allocation4], 256  }
  0x46   :  { %889 = vsyncadd [#allocation4], 4294967040 }
  0x47   :  { %890 = dma.done.wait [#allocation7], 4352  }
  0x48   :  { %891 = vsyncadd [#allocation7], 4294962944 }
  0x49   :  { %892 = dma.done.wait [#allocation10], 2048  }
  0x4a   :  { %893 = vsyncadd [#allocation10], 4294965248  ;;  %v904_v0 = vmov 0   ;;  %v707_v1 = vld [vmem:[#allocation6 + $0x4] ss:$8 sps:$4 sm:$0xff]   ;;  %v88_v3 = vld [vmem:[#allocation3] sm:$0xff]  ;;  %v95_v49 = vlaneseq }
  0x4b   :  { %151 = vmatprep.mubr.bf16.mxu0 %v904_v0  ;;  %v709_v2 = vld [vmem:[#allocation6] ss:$8 sps:$4 sm:$0xff]   ;;  %v89_v4 = vld [vmem:[#allocation3 + $0x8] sm:$0xff]  ;;  %119 = vmatprep.subr.bf16.mxu0 %v707_v1  ;;  %vm115_vm0 = vcmask 130048   ;;  %v713_v8 = vld [vmem:[#allocation8 + $0x14] ss:$8 sps:$4 sm:$0xff]  }
  0x4c   :  { %v90_v5 = vpack.c.bf16 %v89_v4, %v88_v3  ;;  %v710_v6 = vld [vmem:[#allocation8 + $0x4] ss:$8 sps:$4 sm:$0xff]   ;;  %120 = vmatpush1.bf16.msra.mxu0 %v709_v2  ;;  %v712_v7 = vld [vmem:[#allocation8] ss:$8 sps:$4 sm:$0xff]   ;;  %v715_v9 = vld [vmem:[#allocation8 + $0x10] ss:$8 sps:$4 sm:$0xff]  }
  0x4d   :  { %372 = vmatprep.subr.bf16.mxu1 %v710_v6  ;;  %v716_v10 = vld [vmem:[#allocation8 + $0x24] ss:$8 sps:$4 sm:$0xff]   ;;  %v718_v11 = vld [vmem:[#allocation8 + $0x20] ss:$8 sps:$4 sm:$0xff]   ;;  %v719_v12 = vld [vmem:[#allocation8 + $0x34] ss:$8 sps:$4 sm:$0xff]  }
  0x4e   :  { %373 = vmatpush1.bf16.msra.mxu1 %v712_v7  ;;  %v721_v13 = vld [vmem:[#allocation8 + $0x30] ss:$8 sps:$4 sm:$0xff]   ;;  %v722_v14 = vld [vmem:[#allocation8 + $0x44] ss:$8 sps:$4 sm:$0xff]   ;;  %v724_v15 = vld [vmem:[#allocation8 + $0x40] ss:$8 sps:$4 sm:$0xff]  }
  0x4f   :  { %625 = vmatmul.mubr.msk.bf16.vlgmr.msra.gmra.mrb[0].mxu0 %vm115_vm0, %v90_v5  ;;  %374 = vmatprep.subr.bf16.mxu1 %v713_v8  ;;  %v725_v16 = vld [vmem:[#allocation8 + $0x54] ss:$8 sps:$4 sm:$0xff]   ;;  %v727_v17 = vld [vmem:[#allocation8 + $0x50] ss:$8 sps:$4 sm:$0xff]   ;;  %v728_v18 = vld [vmem:[#allocation8 + $0x64] ss:$8 sps:$4 sm:$0xff]  }
  0x50   :  { %v730_v19 = vld [vmem:[#allocation8 + $0x60] ss:$8 sps:$4 sm:$0xff]   ;;  %v731_v20 = vld [vmem:[#allocation8 + $0x74] ss:$8 sps:$4 sm:$0xff]   ;;  %v733_v21 = vld [vmem:[#allocation8 + $0x70] ss:$8 sps:$4 sm:$0xff]  }
  0x51   :  { %v734_v22 = vld [vmem:[#allocation8 + $0x84] ss:$8 sps:$4 sm:$0xff]   ;;  %v736_v23 = vld [vmem:[#allocation8 + $0x80] ss:$8 sps:$4 sm:$0xff]   ;;  %v737_v24 = vld [vmem:[#allocation8 + $0x94] ss:$8 sps:$4 sm:$0xff]  }
  0x52   :  { %375 = vmatpush1.bf16.msra.mxu1 %v715_v9  ;;  %v739_v25 = vld [vmem:[#allocation8 + $0x90] ss:$8 sps:$4 sm:$0xff]   ;;  %v740_v26 = vld [vmem:[#allocation8 + $0xa4] ss:$8 sps:$4 sm:$0xff]   ;;  %v742_v27 = vld [vmem:[#allocation8 + $0xa0] ss:$8 sps:$4 sm:$0xff]  }
  0x53   :  { %376 = vmatprep.subr.bf16.mxu1 %v716_v10  ;;  %v743_v28 = vld [vmem:[#allocation8 + $0xb4] ss:$8 sps:$4 sm:$0xff]   ;;  %v745_v29 = vld [vmem:[#allocation8 + $0xb0] ss:$8 sps:$4 sm:$0xff]   ;;  %v746_v30 = vld [vmem:[#allocation8 + $0xc4] ss:$8 sps:$4 sm:$0xff]  }
  0x54   :  { %v748_v31 = vld [vmem:[#allocation8 + $0xc0] ss:$8 sps:$4 sm:$0xff]   ;;  %v749_v32 = vld [vmem:[#allocation8 + $0xd4] ss:$8 sps:$4 sm:$0xff]   ;;  %v751_v33 = vld [vmem:[#allocation8 + $0xd0] ss:$8 sps:$4 sm:$0xff]  }
  0x55   :  { %v752_v34 = vld [vmem:[#allocation8 + $0xe4] ss:$8 sps:$4 sm:$0xff]   ;;  %v754_v35 = vld [vmem:[#allocation8 + $0xe0] ss:$8 sps:$4 sm:$0xff]   ;;  %v755_v36 = vld [vmem:[#allocation8 + $0xf4] ss:$8 sps:$4 sm:$0xff]  }
  0x56   :  { %377 = vmatpush1.bf16.msra.mxu1 %v718_v11  ;;  %v757_v37 = vld [vmem:[#allocation8 + $0xf0] ss:$8 sps:$4 sm:$0xff]   ;;  %v758_v38 = vld [vmem:[#allocation9 + $0x40] sm:$0xff]   ;;  %v760_v40 = vld [vmem:[#allocation9 + $0x48] sm:$0xff]   ;;  %v96_v50 = vshrl.u32 %v95_v49, 7  ;;  %s905_s19 = smov [#allocation11]  }
  0x57   :  { %378 = vmatprep.subr.bf16.mxu1 %v719_v12  ;;  %v759_v39 = vld [vmem:[#allocation9] sm:$0xff]   ;;  %675 = vmatprep.subr.bf16.mxu0 %v758_v38  ;;  %v761_v41 = vld [vmem:[#allocation9 + $0x8] sm:$0xff]   ;;  %v762_v42 = vld [vmem:[#allocation9 + $0x50] sm:$0xff]   ;;  %s609_s20 = sshll.u32 %s905_s19, 4  ;;  %s610_s20 = int_to_ptr.vmem [resolvable:$true] %s609_s20 }
  0x58   :  { %676 = vmatpush3.bf16.msra.mxu0 %v759_v39  ;;  %v763_v43 = vld [vmem:[#allocation9 + $0x10] sm:$0xff]   ;;  %v764_v44 = vld [vmem:[#allocation9 + $0x58] sm:$0xff]   ;;  %v766_v46 = vld [vmem:[#allocation9 + $0x60] sm:$0xff]   ;;  %v97_v51 = vsub.s32 0, %v96_v50  ;;  %v101_v53 = vsub.s32 1, %v96_v50  ;;  %p871_p5 = scmp.lt.s32.totalorder %s610_s20, %s610_s20 }
  0x59   :  { %677 = vmatprep.subr.bf16.mxu0 %v760_v40  ;;  %v765_v45 = vld [vmem:[#allocation9 + $0x18] sm:$0xff]   ;;  %v767_v47 = vld [vmem:[#allocation9 + $0x20] sm:$0xff]   ;;  %v768_v48 = vld [vmem:[#allocation9 + $0x68] sm:$0xff]  }
  0x5a   :  { %379 = vmatpush1.bf16.msra.mxu1 %v721_v13  ;;  %v93_v52 = vld [vmem:[%s1052_s3] sm:$0x3]  ;;  %v769_v6 = vld [vmem:[#allocation9 + $0x28] sm:$0xff]   ;;  %v770_v7 = vld [vmem:[#allocation9 + $0x70] sm:$0xff]  }
  0x5b   :  { %380 = vmatprep.subr.bf16.mxu1 %v722_v14  ;;  %v98_v54 = vrot.slane %v93_v52, %v97_v51  ;;  %v102_v55 = vrot.slane %v93_v52, %v101_v53  ;;  %v771_v8 = vld [vmem:[#allocation9 + $0x30] sm:$0xff]   ;;  %v772_v9 = vld [vmem:[#allocation9 + $0x78] sm:$0xff]   ;;  %v200_v11 = vld [vmem:[%s1054_s5] sm:$0x3] }
  0x5c   :  { %678 = vmatpush3.bf16.msra.mxu0 %v761_v41  ;;  %v773_v10 = vld [vmem:[#allocation9 + $0x38] sm:$0xff]   ;;  %v205_v12 = vrot.slane %v200_v11, %v97_v51  ;;  %v209_v13 = vrot.slane %v200_v11, %v101_v53 }
  0x5d   :  { %679 = vmatprep.subr.bf16.mxu0 %v762_v42 }
  0x5e   :  { %381 = vmatpush1.bf16.msra.mxu1 %v724_v15 }
  0x5f   :  { %382 = vmatprep.subr.bf16.mxu1 %v725_v16 }
  0x60   :  { %680 = vmatpush3.bf16.msra.mxu0 %v763_v43 }
  0x61   :  { %681 = vmatprep.subr.bf16.mxu0 %v764_v44 }
  0x62   :  { %383 = vmatpush1.bf16.msra.mxu1 %v727_v17 }
  0x63   :  { %384 = vmatprep.subr.bf16.mxu1 %v728_v18 }
  0x64   :  { %682 = vmatpush3.bf16.msra.mxu0 %v765_v45 }
  0x65   :  { %683 = vmatprep.subr.bf16.mxu0 %v766_v46 }
  0x66   :  { %385 = vmatpush1.bf16.msra.mxu1 %v730_v19 }
  0x67   :  { %386 = vmatprep.subr.bf16.mxu1 %v731_v20 }
  0x68   :  { %684 = vmatpush3.bf16.msra.mxu0 %v767_v47 }
  0x69   :  { %685 = vmatprep.subr.bf16.mxu0 %v768_v48 }
  0x6a   :  { %387 = vmatpush1.bf16.msra.mxu1 %v733_v21 }
  0x6b   :  { %388 = vmatprep.subr.bf16.mxu1 %v734_v22 }
  0x6c   :  { %686 = vmatpush3.bf16.msra.mxu0 %v769_v6 }
  0x6d   :  { %687 = vmatprep.subr.bf16.mxu0 %v770_v7 }
  0x6e   :  { %389 = vmatpush1.bf16.msra.mxu1 %v736_v23 }
  0x6f   :  { %390 = vmatprep.subr.bf16.mxu1 %v737_v24 }
  0x70   :  { %688 = vmatpush3.bf16.msra.mxu0 %v771_v8 }
  0x71   :  { %689 = vmatprep.subr.bf16.mxu0 %v772_v9 }
  0x72   :  { %391 = vmatpush1.bf16.msra.mxu1 %v739_v25 }
  0x73   :  { %392 = vmatprep.subr.bf16.mxu1 %v740_v26 }
  0x74   :  { %690 = vmatpush3.bf16.msra.mxu0 %v773_v10 }
  0x76   :  { %393 = vmatpush1.bf16.msra.mxu1 %v742_v27 }
  0x77   :  { %394 = vmatprep.subr.bf16.mxu1 %v743_v28 }
  0x7a   :  { %395 = vmatpush1.bf16.msra.mxu1 %v745_v29  ;;  %v658_v29 = vld [vmem:[%s1056_s7] ss:$0 sm:$0xff]  ;;  %s866_s7 = scalar_lea.vmem %s610_s20, 256 }
  0x7b   :  { %396 = vmatprep.subr.bf16.mxu1 %v746_v30  ;;  %p867_p4 = scmp.ne.s32.totalorder %s610_s20, %s866_s7  ;;  %p872_p6 = scmp.lt.s32.totalorder %s866_s7, %s866_s7 }
  0x7d   :  { %p873_p7 = por %p872_p6, %p871_p5 }
  0x7e   :  { %397 = vmatpush1.bf16.msra.mxu1 %v748_v31 }
  0x7f   :  { %398 = vmatprep.subr.bf16.mxu1 %v749_v32  ;;  %p874_p8 = pnand %p873_p7, %p867_p4 }
  0x82   :  { %399 = vmatpush1.bf16.msra.mxu1 %v751_v33 }
  0x83   :  { %400 = vmatprep.subr.bf16.mxu1 %v752_v34 }
  0x86   :  { %401 = vmatpush1.bf16.msra.mxu1 %v754_v35 }
  0x87   :  { %402 = vmatprep.subr.bf16.mxu1 %v755_v36 }
  0x8a   :  { %403 = vmatpush1.bf16.msra.mxu1 %v757_v37  ;;  %v599_v37 = vstv %s1049_s0 }
 0x122   :  { %v153_v56 = vpop.f32.mrb[0].mxu0 }
 0x123   :  { %v154_v57 = vadd.f32 %v153_v56, %v98_v54  ;;  %v155_v58 = vpop.f32.mrb[1].mxu0 }
 0x124   :  { %v156_v59 = vadd.f32 %v155_v58, %v102_v55  ;;  %v157_v60 = vpop.f32.mrb[2].mxu0 }
 0x125   :  { %v158_v61 = vadd.f32 %v157_v60, %v98_v54  ;;  %v159_v62 = vpop.f32.mrb[3].mxu0  ;;  %v162_v0 = vmax.f32 %v154_v57, 0.0 }
 0x126   :  { %v160_v63 = vadd.f32 %v159_v62, %v102_v55  ;;  %v163_v2 = vmax.f32 %v156_v59, 0.0 }
 0x127   :  { %v164_v1 = vmax.f32 %v158_v61, 0.0 }
 0x128   :  { %v165_v3 = vmax.f32 %v160_v63, 0.0 }
 0x129   :  { %v166_v4 = vpack.c.bf16 %v164_v1, %v162_v0 }
 0x12a   :  { %v167_v5 = vpack.c.bf16 %v165_v3, %v163_v2 }
 0x12c   :  { %404 = vmatprep.mubr.bf16.mxu1 %v167_v5 }
 0x12d   :  { %405 = vmatmul.mubr.bf16.vlgmr.msra.gmra.mrb[0].mxu1 %v166_v4 }
 0x200   :  { %v406_v14 = vpop.f32.mrb[0].mxu1 }
 0x201   :  { %v407_v15 = vadd.f32 %v406_v14, %v205_v12  ;;  %v408_v16 = vpop.f32.mrb[1].mxu1 }
 0x202   :  { %v409_v17 = vadd.f32 %v408_v16, %v209_v13  ;;  %v410_v18 = vpop.f32.mrb[2].mxu1 }
 0x203   :  { %v411_v19 = vadd.f32 %v410_v18, %v205_v12  ;;  %v412_v20 = vpop.f32.mrb[3].mxu1  ;;  %v415_v22 = vmax.f32 %v407_v15, 0.0 }
 0x204   :  { %v413_v21 = vadd.f32 %v412_v20, %v209_v13  ;;  %v416_v24 = vmax.f32 %v409_v17, 0.0 }
 0x205   :  { %v417_v23 = vmax.f32 %v411_v19, 0.0 }
 0x206   :  { %v418_v25 = vmax.f32 %v413_v21, 0.0 }
 0x207   :  { %v419_v26 = vpack.c.bf16 %v417_v23, %v415_v22 }
 0x208   :  { %v420_v27 = vpack.c.bf16 %v418_v25, %v416_v24 }
 0x20a   :  { %588 = vmatprep.mubr.bf16.mxu0 %v420_v27 }
 0x20b   :  { %589 = vmatmul.mubr.bf16.vlgmr.msra.gmra.mrb[4].mxu0 %v419_v26 }
 0x2de   :  { %v691_v28 = vpop.f32.mrb[4].mxu0 }
 0x2df   :  { %v692_v30 = vpop.f32.mrb[5].mxu0 }
 0x2e0   :  { %v693_v31 = vadd.f32 %v692_v30, %v691_v28  ;;  %v694_v32 = vpop.f32.mrb[6].mxu0 }
 0x2e1   :  { %v695_v33 = vpop.f32.mrb[7].mxu0 }
 0x2e2   :  { %v591_v34 = vadd.f32 %v693_v31, %v658_v29  ;;  %v696_v35 = vadd.f32 %v695_v33, %v694_v32 }
 0x2e4   :  { %774 = vtanh.f32 %v591_v34  ;;  %v594_v36 = vadd.f32 %v696_v35, %v658_v29 }
 0x2e6   :  { %776 = vtanh.f32 %v594_v36 }
 0x2ee   :  { %v775_v38 = vpop.eup %774 }
 0x2ef   :  { %v600_v39 = vmul.f32 %v775_v38, %v599_v37 }
 0x2f0   :  { %v777_v40 = vpop.eup %776 }
 0x2f1   :  { %v601_v41 = vmul.f32 %v777_v40, %v599_v37  ;;  %602 = vst [vmem:[#allocation11] sm:$0xff] %v600_v39 }
 0x2f3   :  { %603 = vst [vmem:[#allocation11 + $0x8] sm:$0xff] %v601_v41 }
 0x2f4   :  { %877 = shalt.err (!%p874_p8)
}
 0x2f5   :  { %s878_s0 = scalar_lea.hbm %s1057_s8, 256 }
 0x2f6   :  { %p879_p9 = scmp.ne.s32.totalorder %s1057_s8, %s878_s0  ;;  %p882_p10 = scmp.lt.u32.totalorder %s878_s0, %s1057_s8 }
 0x2f8   :  { %p884_p11 = pnand %p882_p10, %p879_p9 }
 0x2fa   :  { %887 = shalt.err (!%p884_p11)
}
 0x2fb   :  { %615 = dma.vmem_to_hbm [thread:$0]  %s610_s20, 256, %s1057_s8, [#allocation5], %s898_s17, %s898_s17, %s899_s18  }
 0x2fc   :  { %894 = dma.done.wait [#allocation5], 256  }
 0x2fd   :  { %895 = vsyncadd [#allocation5], 4294967040 }
 0x2fe   :  { %619 = vsyncpa [#allocation4], 1 }
 0x2ff   :  { %620 = vsyncpa [#allocation7], 1 }
 0x300   :  { %621 = vsyncpa [#allocation10], 1 }
 0x301   :  { %622 = vsyncpa [#allocation5], 1 }

</bundles_post_ra>
